<compile_context>
chip_gen: v5e
topology: v5e:2x2
jax: 0.10.0
libtpu: 0.0.40
codegen_flags: <defaults>
</compile_context>

<pallas_src>
import math

import jax
import jax.numpy as jnp
from jax.experimental import pallas as pl
from jax.experimental.pallas import tpu as pltpu


def _make_kernel(use_bf16: bool, bf16_act: bool):
    act_dtype = jnp.bfloat16 if bf16_act else jnp.float32
    mm_dtype = jnp.bfloat16 if use_bf16 else jnp.float32

    def node_func_kernel(y_ref, w1b1_ref, w23_ref, b23_ref, w4b4_ref, o_ref):
        """Whole MLP hot path: VPU FMAs for the K=2 layer, MXU for the rest."""
        y = y_ref[...]                              # (TM, 2) f32

        w1 = w1b1_ref[0:2, :]                       # (2, 128)
        b1 = w1b1_ref[2:3, :]                       # (1, 128)

        # Layer 1: K=2 matmul replaced by two broadcast multiply-adds on the
        # VPU (a K=2 matmul would waste >98% of the MXU array and would need
        # a sub-(8,128) padded weight tile).
        pre = y[:, 0:1] * w1[0:1, :] + y[:, 1:2] * w1[1:2, :] + b1
        h = jnp.tanh(pre.astype(act_dtype))

        # Layers 2/3: 128x128 MXU matmuls, f32 accumulation.  Weights arrive
        # already in their matmul dtype (cast once in the wrapper, never in
        # the per-step hot path).
        hid = w23_ref.shape[1] // 2
        w2 = w23_ref[:, 0:hid]
        w3 = w23_ref[:, hid:2 * hid]
        b2 = b23_ref[0:1, :]
        b3 = b23_ref[1:2, :]

        pre = jnp.dot(h.astype(mm_dtype), w2,
                      preferred_element_type=jnp.float32) + b2
        h = jnp.tanh(pre.astype(act_dtype))

        pre = jnp.dot(h.astype(mm_dtype), w3,
                      preferred_element_type=jnp.float32) + b3
        h = jnp.tanh(pre.astype(act_dtype))

        # Output layer (N=2). Output block is (TM, 2): last dim equals the
        # full array dim, so the (8,128) tiling rule is satisfied; lane width
        # is tiny but so is the output volume.
        n_in = w4b4_ref.shape[0] - 1
        w4 = w4b4_ref[0:n_in, :]                    # (128, 2)
        b4 = w4b4_ref[n_in:n_in + 1, :]             # (1, 2)
        out = jnp.dot(h.astype(jnp.float32), w4,
                      preferred_element_type=jnp.float32) + b4
        o_ref[...] = out.astype(o_ref.dtype)

    return node_func_kernel


def _pack_params(params, use_bf16):
    """Pack 8 weight/bias arrays into 4 VMEM-resident slabs."""
    (w1, b1), (w2, b2), (w3, b3), (w4, b4) = params
    mm_dtype = jnp.bfloat16 if use_bf16 else jnp.float32
    w1b1 = jnp.concatenate([w1, b1.reshape(1, -1)], axis=0)                 # (3, 128)
    w23 = jnp.concatenate([w2, w3], axis=1).astype(mm_dtype)                # (128, 256)
    b23 = jnp.concatenate([b2.reshape(1, -1), b3.reshape(1, -1)], axis=0)   # (2, 128)
    w4b4 = jnp.concatenate([w4, b4.reshape(1, -1)], axis=0)                 # (129, 2)
    return w1b1, w23, b23, w4b4


def node_func_forward(t, y, params, *, block_tm=None, use_bf16=False,
                      bf16_act=False):
    """Pallas wrapper. `t` is unused (matches the PyTorch forward signature)."""
    del t
    (w1, _), _, _, (w4, _) = params
    B, in_dim = y.shape
    out_dim = w4.shape[1]

    # Batch tile: sublane-aligned (multiple of 8), capped at 1024 rows so the
    # grid-step overhead (~0.35 us) is amortized.  For B > 16 force at least
    # two tiles so the "parallel" axis gives v7x's second TensorCore work.
    if block_tm is None:
        if B <= 16:
            block_tm = 8 * pl.cdiv(max(B, 1), 8)
        else:
            block_tm = min(1024, 8 * pl.cdiv(pl.cdiv(B, 2), 8))
    num_tiles = pl.cdiv(B, block_tm)
    b_pad = num_tiles * block_tm
    if b_pad != B:
        y = jnp.pad(y, ((0, b_pad - B), (0, 0)))

    w1b1, w23, b23, w4b4 = _pack_params(params, use_bf16)

    # Resident operands: full-array blocks whose index_map always returns
    # block (0, 0) -> loaded into VMEM once, reused across all grid steps.
    def resident(arr):
        return pl.BlockSpec(arr.shape, lambda i: (0, 0))

    in_specs = [
        pl.BlockSpec((block_tm, in_dim), lambda i: (i, 0)),   # y: batch-blocked
        resident(w1b1),
        resident(w23),
        resident(b23),
        resident(w4b4),
    ]
    out_specs = pl.BlockSpec((block_tm, out_dim), lambda i: (i, 0))

    out = pl.pallas_call(
        _make_kernel(use_bf16, bf16_act),
        out_shape=jax.ShapeDtypeStruct((b_pad, out_dim), y.dtype),
        grid=(num_tiles,),
        in_specs=in_specs,
        out_specs=out_specs,
        compiler_params=pltpu.CompilerParams(
            # Batch tiles are independent -> megacore split on v7x.
            dimension_semantics=("parallel",),
            # ~135 KB resident weights + double-buffered (1024,2) y/out tiles
            # + a few (1024,128) f32 temporaries: well under 16 MiB, which is
            # safe on v5e/v6e (128 MiB) and v7x (64 MiB phys / 32 MiB scoped).
            vmem_limit_bytes=16 * 1024 * 1024,
        ),
    )(y, w1b1, w23, b23, w4b4)

    return out[:B] if b_pad != B else out


def init_params(key, dims=(2, 128, 128, 128, 2), dtype=jnp.float32):
    """Deterministic PyTorch-style init: U(-1/sqrt(fan_in), 1/sqrt(fan_in))."""
    params = []
    for i in range(len(dims) - 1):
        fan_in, fan_out = dims[i], dims[i + 1]
        key, kw, kb = jax.random.split(key, 3)
        bound = 1.0 / math.sqrt(fan_in)
        w = jax.random.uniform(kw, (fan_in, fan_out), dtype,
                               minval=-bound, maxval=bound)
        b = jax.random.uniform(kb, (1, fan_out), dtype,
                               minval=-bound, maxval=bound)
        params.append((w, b))
    return params


def node_func_reference(y, params):
    """Pure-JAX reference for a correctness check."""
    (w1, b1), (w2, b2), (w3, b3), (w4, b4) = params
    h = jnp.tanh(y @ w1 + b1)
    h = jnp.tanh(h @ w2 + b2)
    h = jnp.tanh(h @ w3 + b3)
    return h @ w4 + b4


if __name__ == "__main__":
    key = jax.random.PRNGKey(0)
    key, ky = jax.random.split(key)

    params = init_params(key)
    t = jnp.float32(0.0)        # ignored by the dynamics function

    # Small batch of 2-D ODE states (matches how an ODE solver calls this).
    B = 8
    y = jax.random.normal(ky, (B, 2), dtype=jnp.float32)
    out = jax.block_until_ready(node_func_forward(t, y, params))
    ref = node_func_reference(y, params)
    assert out.shape == (B, 2), out.shape
    assert jnp.allclose(out, ref, atol=1e-5, rtol=1e-5), \
        f"max abs err = {jnp.max(jnp.abs(out - ref))}"

    # Second check: non-multiple batch exercising the multi-tile grid
    # (>= 2 tiles for v7x) and the padding path.
    key, ky2 = jax.random.split(key)
    B2 = 300
    y2 = jax.random.normal(ky2, (B2, 2), dtype=jnp.float32)
    out2 = jax.block_until_ready(node_func_forward(t, y2, params))
    ref2 = node_func_reference(y2, params)
    assert out2.shape == (B2, 2), out2.shape
    assert jnp.allclose(out2, ref2, atol=1e-5, rtol=1e-5), \
        f"max abs err = {jnp.max(jnp.abs(out2 - ref2))}"

    print("KERNEL_OK")
</pallas_src>

<mosaic_0001>
module attributes {stable_mosaic.version = 11 : i64} {
  func.func @node_func_kernel(%arg0: i32, %arg1: memref<8x2xf32, #tpu.memory_space<vmem>>, %arg2: memref<3x128xf32, #tpu.memory_space<vmem>>, %arg3: memref<128x256xf32, #tpu.memory_space<vmem>>, %arg4: memref<2x128xf32, #tpu.memory_space<vmem>>, %arg5: memref<129x2xf32, #tpu.memory_space<vmem>>, %arg6: memref<8x2xf32, #tpu.memory_space<vmem>>) attributes {dimension_semantics = [#tpu.dimension_semantics<parallel>], iteration_bounds = array<i64: 1>, scalar_prefetch = 0 : i64, scratch_operands = 0 : i64, tpu.core_type = #tpu.core_type<tc>, window_params = [{transform_indices = @transform_0, window_bounds = array<i64: 8, 2>}, {pipeline_mode = #tpu.pipeline_mode<synchronous>, transform_indices = @transform_1, window_bounds = array<i64: 3, 128>}, {pipeline_mode = #tpu.pipeline_mode<synchronous>, transform_indices = @transform_2, window_bounds = array<i64: 128, 256>}, {pipeline_mode = #tpu.pipeline_mode<synchronous>, transform_indices = @transform_3, window_bounds = array<i64: 2, 128>}, {pipeline_mode = #tpu.pipeline_mode<synchronous>, transform_indices = @transform_4, window_bounds = array<i64: 129, 2>}, {transform_indices = @transform_5, window_bounds = array<i64: 8, 2>}]} {
    %c0 = arith.constant 0 : index
    %c0_0 = arith.constant 0 : index
    %0 = vector.load %arg1[%c0, %c0_0] : memref<8x2xf32, #tpu.memory_space<vmem>>, vector<8x2xf32>
    %c0_1 = arith.constant 0 : index
    %c0_2 = arith.constant 0 : index
    %1 = vector.load %arg2[%c0_1, %c0_2] : memref<3x128xf32, #tpu.memory_space<vmem>>, vector<2x128xf32>
    %c2 = arith.constant 2 : index
    %c0_3 = arith.constant 0 : index
    %2 = vector.load %arg2[%c2, %c0_3] : memref<3x128xf32, #tpu.memory_space<vmem>>, vector<1x128xf32>
    %3 = vector.extract_strided_slice %0 {offsets = [0, 0], sizes = [8, 1], strides = [1, 1]} : vector<8x2xf32> to vector<8x1xf32>
    %4 = vector.extract_strided_slice %1 {offsets = [0, 0], sizes = [1, 128], strides = [1, 1]} : vector<2x128xf32> to vector<1x128xf32>
    %5 = vector.broadcast %3 : vector<8x1xf32> to vector<8x128xf32>
    %6 = vector.broadcast %4 : vector<1x128xf32> to vector<8x128xf32>
    %7 = arith.mulf %5, %6 : vector<8x128xf32>
    %8 = vector.extract_strided_slice %0 {offsets = [0, 1], sizes = [8, 1], strides = [1, 1]} : vector<8x2xf32> to vector<8x1xf32>
    %9 = vector.extract_strided_slice %1 {offsets = [1, 0], sizes = [1, 128], strides = [1, 1]} : vector<2x128xf32> to vector<1x128xf32>
    %10 = vector.broadcast %8 : vector<8x1xf32> to vector<8x128xf32>
    %11 = vector.broadcast %9 : vector<1x128xf32> to vector<8x128xf32>
    %12 = arith.mulf %10, %11 : vector<8x128xf32>
    %13 = arith.addf %7, %12 : vector<8x128xf32>
    %14 = vector.broadcast %2 : vector<1x128xf32> to vector<8x128xf32>
    %15 = arith.addf %13, %14 : vector<8x128xf32>
    %16 = math.tanh %15 : vector<8x128xf32>
    %c0_4 = arith.constant 0 : index
    %c0_5 = arith.constant 0 : index
    %17 = vector.load %arg3[%c0_4, %c0_5] : memref<128x256xf32, #tpu.memory_space<vmem>>, vector<128x128xf32>
    %c0_6 = arith.constant 0 : index
    %c128 = arith.constant 128 : index
    %18 = vector.load %arg3[%c0_6, %c128] : memref<128x256xf32, #tpu.memory_space<vmem>>, vector<128x128xf32>
    %c0_7 = arith.constant 0 : index
    %c0_8 = arith.constant 0 : index
    %19 = vector.load %arg4[%c0_7, %c0_8] : memref<2x128xf32, #tpu.memory_space<vmem>>, vector<1x128xf32>
    %c1 = arith.constant 1 : index
    %c0_9 = arith.constant 0 : index
    %20 = vector.load %arg4[%c1, %c0_9] : memref<2x128xf32, #tpu.memory_space<vmem>>, vector<1x128xf32>
    %cst = arith.constant dense<0.000000e+00> : vector<8x128xf32>
    %21 = tpu.matmul %16, %17, %cst {dimension_numbers = #tpu.dot_dimension_numbers<[1], [0], [0], [1], [0, 0, 1, 1], [], []>} : vector<8x128xf32>, vector<128x128xf32>, vector<8x128xf32> -> vector<8x128xf32>
    %22 = vector.broadcast %19 : vector<1x128xf32> to vector<8x128xf32>
    %23 = arith.addf %21, %22 : vector<8x128xf32>
    %24 = math.tanh %23 : vector<8x128xf32>
    %cst_10 = arith.constant dense<0.000000e+00> : vector<8x128xf32>
    %25 = tpu.matmul %24, %18, %cst_10 {dimension_numbers = #tpu.dot_dimension_numbers<[1], [0], [0], [1], [0, 0, 1, 1], [], []>} : vector<8x128xf32>, vector<128x128xf32>, vector<8x128xf32> -> vector<8x128xf32>
    %26 = vector.broadcast %20 : vector<1x128xf32> to vector<8x128xf32>
    %27 = arith.addf %25, %26 : vector<8x128xf32>
    %28 = math.tanh %27 : vector<8x128xf32>
    %c0_11 = arith.constant 0 : index
    %c0_12 = arith.constant 0 : index
    %29 = vector.load %arg5[%c0_11, %c0_12] : memref<129x2xf32, #tpu.memory_space<vmem>>, vector<128x2xf32>
    %c128_13 = arith.constant 128 : index
    %c0_14 = arith.constant 0 : index
    %30 = vector.load %arg5[%c128_13, %c0_14] : memref<129x2xf32, #tpu.memory_space<vmem>>, vector<1x2xf32>
    %cst_15 = arith.constant dense<0.000000e+00> : vector<8x2xf32>
    %31 = tpu.matmul %28, %29, %cst_15 {dimension_numbers = #tpu.dot_dimension_numbers<[1], [0], [0], [1], [0, 0, 1, 1], [], []>} : vector<8x128xf32>, vector<128x2xf32>, vector<8x2xf32> -> vector<8x2xf32>
    %32 = vector.broadcast %30 : vector<1x2xf32> to vector<8x2xf32>
    %33 = arith.addf %31, %32 : vector<8x2xf32>
    %c0_16 = arith.constant 0 : index
    %c0_17 = arith.constant 0 : index
    %34 = vector.load %arg6[%c0_16, %c0_17] : memref<8x2xf32, #tpu.memory_space<vmem>>, vector<8x2xf32>
    tpu.vector_store %arg6[%c0_16, %c0_17], %33 {strides = array<i32>} : memref<8x2xf32, #tpu.memory_space<vmem>>, vector<8x2xf32>,
    return
  }
  func.func @transform_0(%arg0: i32) -> (i32, i32) {
    %c0_i32 = arith.constant 0 : i32
    %c0_i32_0 = arith.constant 0 : i32
    return %arg0, %c0_i32 : i32, i32
  }
  func.func @transform_1(%arg0: i32) -> (i32, i32) {
    %c0_i32 = arith.constant 0 : i32
    %c0_i32_0 = arith.constant 0 : i32
    %c0_i32_1 = arith.constant 0 : i32
    return %c0_i32, %c0_i32_0 : i32, i32
  }
  func.func @transform_2(%arg0: i32) -> (i32, i32) {
    %c0_i32 = arith.constant 0 : i32
    %c0_i32_0 = arith.constant 0 : i32
    %c0_i32_1 = arith.constant 0 : i32
    return %c0_i32, %c0_i32_0 : i32, i32
  }
  func.func @transform_3(%arg0: i32) -> (i32, i32) {
    %c0_i32 = arith.constant 0 : i32
    %c0_i32_0 = arith.constant 0 : i32
    %c0_i32_1 = arith.constant 0 : i32
    return %c0_i32, %c0_i32_0 : i32, i32
  }
  func.func @transform_4(%arg0: i32) -> (i32, i32) {
    %c0_i32 = arith.constant 0 : i32
    %c0_i32_0 = arith.constant 0 : i32
    %c0_i32_1 = arith.constant 0 : i32
    return %c0_i32, %c0_i32_0 : i32, i32
  }
  func.func @transform_5(%arg0: i32) -> (i32, i32) {
    %c0_i32 = arith.constant 0 : i32
    %c0_i32_0 = arith.constant 0 : i32
    return %arg0, %c0_i32 : i32, i32
  }
}

</mosaic_0001>

<bundles_post_ra>
// kernel: tpu_custom_call.1
= control target key start
LH: loop header
LB: loop body
LE: loop exit
PB: predicated region body
PF: predicated region fallthrough
CT: control target
= control target key end

     0   :  { %10 = vsyncpa [#allocation3], 0  ;;  %s222_s21 = smov [#allocation2]   ;;  %s223_s23 = smov 256   ;;  %s329_s0 = inlined_call_operand.vmem [shape: f32[8,2], index: 0, kind: input, shape index: {}]   ;;  %s330_s1 = inlined_call_operand.vmem [shape: f32[3,128], index: 1, kind: input, shape index: {}]   ;;  %s331_s2 = inlined_call_operand.hbm [shape: f32[128,256], index: 2, kind: input, shape index: {}]   ;;  %s332_s3 = inlined_call_operand.vmem [shape: f32[2,128], index: 3, kind: input, shape index: {}]   ;;  %s333_s4 = inlined_call_operand.vmem [shape: f32[129,2], index: 4, kind: input, shape index: {}]   ;;  %s334_s5 = inlined_call_operand.vmem [shape: f32[8,2], index: 5, kind: output, shape index: {}]  }
   0x1   :  { %s19_s20 = sshll.u32 %s331_s2, 4  ;;  %s21_s22 = sshll.u32 %s222_s21, 4  ;;  %s20_s20 = int_to_ptr.hbm [resolvable:$true] %s19_s20  ;;  %s22_s22 = int_to_ptr.vmem [resolvable:$true] %s21_s22 }
   0x2   :  { %s224_s24 = smov 16  }
   0x3   :  { %27 = dma.hbm_to_vmem [thread:$0]  %s20_s20, 4096, %s22_s22, [#allocation3], %s223_s23, %s223_s23, %s224_s24  }
   0x4   :  { %220 = dma.done.wait [#allocation3], 4096  }
   0x5   :  { %221 = vsyncadd [#allocation3], 4294963200  ;;  %v225_v0 = vmov 0   ;;  %v36_v1 = vld [vmem:[%s329_s0] sm:$0xff]  ;;  %v71_v2 = vld [vmem:[#allocation2 + $0xf0] sm:$0xff]  ;;  %v226_v7 = vmov 1  }
   0x6   :  { %184 = vset.pattern.permute.xlu0 %v225_v0  ;;  %v70_v3 = vld [vmem:[#allocation2 + $0xe0] sm:$0xff]  ;;  %91 = vmatpush.msra.mxu0 %v71_v2  ;;  %v69_v4 = vld [vmem:[#allocation2 + $0xd0] sm:$0xff]  ;;  %v87_v19 = vld [vmem:[#allocation2 + $0xf8] sm:$0xff]  ;;  %vm172_vm0 = vcmask 15360  }
   0x7   :  { %41 = vperm.xlu0 %184, %v36_v1   ;;  %v68_v5 = vld [vmem:[#allocation2 + $0xc0] sm:$0xff]  ;;  %v67_v6 = vld [vmem:[#allocation2 + $0xb0] sm:$0xff]  ;;  %v86_v20 = vld [vmem:[#allocation2 + $0xe8] sm:$0xff]  ;;  %113 = vmatpush.msra.mxu1 %v87_v19 }
   0x8   :  { %92 = vmatpush.msra.mxu0 %v70_v3  ;;  %v66_v8 = vld [vmem:[#allocation2 + $0xa0] sm:$0xff]  ;;  %v65_v9 = vld [vmem:[#allocation2 + $0x90] sm:$0xff]  ;;  %v85_v21 = vld [vmem:[#allocation2 + $0xd8] sm:$0xff] }
   0x9   :  { %v64_v10 = vld [vmem:[#allocation2 + $0x80] sm:$0xff]  ;;  %v63_v11 = vld [vmem:[#allocation2 + $0x70] sm:$0xff]  ;;  %114 = vmatpush.msra.mxu1 %v86_v20  ;;  %v84_v22 = vld [vmem:[#allocation2 + $0xc8] sm:$0xff] }
   0xa   :  { %93 = vmatpush.msra.mxu0 %v69_v4  ;;  %v62_v12 = vld [vmem:[#allocation2 + $0x60] sm:$0xff]  ;;  %v61_v13 = vld [vmem:[#allocation2 + $0x50] sm:$0xff]  ;;  %v83_v23 = vld [vmem:[#allocation2 + $0xb8] sm:$0xff] }
   0xb   :  { %v60_v14 = vld [vmem:[#allocation2 + $0x40] sm:$0xff]  ;;  %v59_v15 = vld [vmem:[#allocation2 + $0x30] sm:$0xff]  ;;  %115 = vmatpush.msra.mxu1 %v85_v21  ;;  %v82_v24 = vld [vmem:[#allocation2 + $0xa8] sm:$0xff] }
   0xc   :  { %94 = vmatpush.msra.mxu0 %v68_v5  ;;  %v58_v16 = vld [vmem:[#allocation2 + $0x20] sm:$0xff]  ;;  %v57_v17 = vld [vmem:[#allocation2 + $0x10] sm:$0xff]  ;;  %v81_v26 = vld [vmem:[#allocation2 + $0x98] sm:$0xff] }
   0xd   :  { %v56_v18 = vld [vmem:[#allocation2] sm:$0xff]  ;;  %116 = vmatpush.msra.mxu1 %v84_v22  ;;  %v80_v28 = vld [vmem:[#allocation2 + $0x88] sm:$0xff]  ;;  %v79_v29 = vld [vmem:[#allocation2 + $0x78] sm:$0xff] }
   0xe   :  { %95 = vmatpush.msra.mxu0 %v67_v6  ;;  %v37_v27 = vld [vmem:[%s330_s1] sm:$0x3]  ;;  %v78_v32 = vld [vmem:[#allocation2 + $0x68] sm:$0xff]  ;;  %v77_v34 = vld [vmem:[#allocation2 + $0x58] sm:$0xff] }
   0xf   :  { %185 = vset.pattern.permute.xlu0 %v226_v7  ;;  %117 = vmatpush.msra.mxu1 %v83_v23  ;;  %v44_v30 = vperm.slane %v37_v27, 0  ;;  %v50_v31 = vperm.slane %v37_v27, 1  ;;  %v186_v36 = vld [vmem:[%s330_s1 + $0x2] ss:$0 sm:$0xff]  ;;  %v76_v41 = vld [vmem:[#allocation2 + $0x48] sm:$0xff]  ;;  %v75_v42 = vld [vmem:[#allocation2 + $0x38] sm:$0xff] }
  0x10   :  { %47 = vperm.xlu0 %185, %v36_v1   ;;  %96 = vmatpush.msra.mxu0 %v66_v8  ;;  %v74_v43 = vld [vmem:[#allocation2 + $0x28] sm:$0xff]  ;;  %v73_v44 = vld [vmem:[#allocation2 + $0x18] sm:$0xff]  ;;  %v148_v47 = vld [vmem:[%s333_s4 + $0x70] sm:$0xff] }
  0x11   :  { %118 = vmatpush.msra.mxu1 %v82_v24  ;;  %v72_v45 = vld [vmem:[#allocation2 + $0x8] sm:$0xff]  ;;  %v149_v46 = vld [vmem:[%s333_s4 + $0x78] sm:$0xff]  ;;  %v146_v49 = vld [vmem:[%s333_s4 + $0x60] sm:$0xff] }
  0x12   :  { %97 = vmatpush.msra.mxu0 %v65_v9  ;;  %152 = vmatpush.msra.mxu2 %v149_v46  ;;  %v147_v48 = vld [vmem:[%s333_s4 + $0x68] sm:$0xff]  ;;  %v145_v50 = vld [vmem:[%s333_s4 + $0x58] sm:$0xff]  ;;  %v144_v51 = vld [vmem:[%s333_s4 + $0x50] sm:$0xff] }
  0x13   :  { %119 = vmatpush.msra.mxu1 %v81_v26  ;;  %v143_v52 = vld [vmem:[%s333_s4 + $0x48] sm:$0xff]  ;;  %v142_v53 = vld [vmem:[%s333_s4 + $0x40] sm:$0xff]  ;;  %v141_v54 = vld [vmem:[%s333_s4 + $0x38] sm:$0xff] }
  0x14   :  { %98 = vmatpush.msra.mxu0 %v64_v10  ;;  %153 = vmatpush.msra.mxu2 %v148_v47  ;;  %v140_v55 = vld [vmem:[%s333_s4 + $0x30] sm:$0xff]  ;;  %v139_v56 = vld [vmem:[%s333_s4 + $0x28] sm:$0xff]  ;;  %v187_v57 = vld [vmem:[%s332_s3] ss:$0 sm:$0xff] }
  0x15   :  { %120 = vmatpush.msra.mxu1 %v80_v28  ;;  %v138_v61 = vld [vmem:[%s333_s4 + $0x20] sm:$0xff]  ;;  %v137_v62 = vld [vmem:[%s333_s4 + $0x18] sm:$0xff]  ;;  %v136_v63 = vld [vmem:[%s333_s4 + $0x10] sm:$0xff] }
  0x16   :  { %99 = vmatpush.msra.mxu0 %v63_v11  ;;  %154 = vmatpush.msra.mxu2 %v147_v48  ;;  %v135_v0 = vld [vmem:[%s333_s4 + $0x8] sm:$0xff]  ;;  %v134_v1 = vld [vmem:[%s333_s4] sm:$0xff] }
  0x17   :  { %121 = vmatpush.msra.mxu1 %v79_v29  ;;  %v188_v2 = vld [vmem:[%s332_s3 + $0x1] ss:$0 sm:$0xff]  ;;  %v189_v6 = vld [vmem:[%s333_s4 + $0x80] ss:$0 sm:$0xff] }
  0x18   :  { %100 = vmatpush.msra.mxu0 %v62_v12  ;;  %155 = vmatpush.msra.mxu2 %v146_v49 }
  0x19   :  { %122 = vmatpush.msra.mxu1 %v78_v32 }
  0x1a   :  { %101 = vmatpush.msra.mxu0 %v61_v13  ;;  %156 = vmatpush.msra.mxu2 %v145_v50 }
  0x1b   :  { %123 = vmatpush.msra.mxu1 %v77_v34 }
  0x1c   :  { %102 = vmatpush.msra.mxu0 %v60_v14  ;;  %157 = vmatpush.msra.mxu2 %v144_v51 }
  0x1d   :  { %124 = vmatpush.msra.mxu1 %v76_v41 }
  0x1e   :  { %103 = vmatpush.msra.mxu0 %v59_v15  ;;  %158 = vmatpush.msra.mxu2 %v143_v52 }
  0x1f   :  { %125 = vmatpush.msra.mxu1 %v75_v42 }
  0x20   :  { %104 = vmatpush.msra.mxu0 %v58_v16  ;;  %159 = vmatpush.msra.mxu2 %v142_v53 }
  0x21   :  { %126 = vmatpush.msra.mxu1 %v74_v43 }
  0x22   :  { %105 = vmatpush.msra.mxu0 %v57_v17  ;;  %160 = vmatpush.msra.mxu2 %v141_v54 }
  0x23   :  { %127 = vmatpush.msra.mxu1 %v73_v44 }
  0x24   :  { %106 = vmatpush.msra.mxu0 %v56_v18  ;;  %161 = vmatpush.msra.mxu2 %v140_v55 }
  0x25   :  { %128 = vmatpush.msra.mxu1 %v72_v45 }
  0x26   :  { %162 = vmatpush.msra.mxu2 %v139_v56 }
  0x28   :  { %163 = vmatpush.msra.mxu2 %v138_v61 }
  0x2a   :  { %164 = vmatpush.msra.mxu2 %v137_v62 }
  0x2c   :  { %165 = vmatpush.msra.mxu2 %v136_v63 }
  0x2e   :  { %166 = vmatpush.msra.mxu2 %v135_v0 }
  0x30   :  { %167 = vmatpush.msra.mxu2 %v134_v1 }
  0x79   :  { %v42_v25 = vpop.permute.xlu0 %41 }
  0x7a   :  { %v45_v35 = vmul.f32 %v44_v30, %v42_v25 }
  0x82   :  { %v48_v33 = vpop.permute.xlu0 %47 }
  0x83   :  { %v51_v37 = vmul.f32 %v50_v31, %v48_v33 }
  0x85   :  { %v52_v38 = vadd.f32 %v51_v37, %v45_v35 }
  0x87   :  { %v54_v39 = vadd.f32 %v186_v36, %v52_v38 }
  0x89   :  { %190 = vtanh.f32 %v54_v39 }
  0x8f   :  { %v191_v40 = vpop.eup %190 }
  0x90   :  { %107 = vmatmul.f32.vlgmr.msra.gmra.mxu0 %v191_v40 }
 0x10d   :  { %v108_v58 = vpop.f32.mrf.mxu0 }
 0x10e   :  { %v109_v59 = vadd.f32 %v187_v57, %v108_v58 }
 0x110   :  { %192 = vtanh.f32 %v109_v59 }
 0x116   :  { %v193_v60 = vpop.eup %192 }
 0x117   :  { %129 = vmatmul.f32.vlgmr.msra.gmra.mxu1 %v193_v60 }
 0x194   :  { %v130_v3 = vpop.f32.mrf.mxu1 }
 0x195   :  { %v131_v4 = vadd.f32 %v188_v2, %v130_v3 }
 0x197   :  { %194 = vtanh.f32 %v131_v4 }
 0x19d   :  { %v195_v5 = vpop.eup %194 }
 0x19e   :  { %168 = vmatmul.f32.vlgmr.msra.gmra.mxu2 %v195_v5 }
 0x221   :  { %v169_v7 = vpop.f32.mrf.mxu2 }
 0x222   :  { %v170_v8 = vadd.f32 %v189_v6, %v169_v7 }
 0x224   :  { %173 = vst.msk [vmem:[%s334_s5] sm:$0xff] %vm172_vm0, %v170_v8 }
 0x225   :  { %178 = vsyncpa [#allocation3], 1 }

</bundles_post_ra>
